<compile_context>
chip_gen: v5e
topology: v5e:2x2
jax: 0.10.0
libtpu: 0.0.40
codegen_flags: <defaults>
</compile_context>

<pallas_src>
import numpy as np
import jax
import jax.numpy as jnp
from jax.experimental import pallas as pl
from jax.experimental.pallas import tpu as pltpu

LN_EPS = 1e-12


def _noise_generator_kernel(x_ref,
                            w1_ref, b1_ref,
                            w2_ref, b2_ref,
                            w3_ref, b3_ref,
                            w4_ref, b4_ref,
                            gsum_ref, gamma_ref, beta_ref,
                            o_ref):
    """x_ref: (TM, Wp) f32 packed gaussian noise; weights are packed bf16
    block-diagonal (in, out); biases / gamma / beta are (1, Wp_out) f32."""

    def lin_relu(h_f32, w_ref, b_ref):
        # bf16 operands on the MXU, f32 accumulation; bias + ReLU in f32 (VPU).
        y = jnp.dot(h_f32.astype(jnp.bfloat16), w_ref[...],
                    preferred_element_type=jnp.float32)
        return jnp.maximum(y + b_ref[...], 0.0)

    h = x_ref[...]                     # (TM, Wp) f32
    h = lin_relu(h, w1_ref, b1_ref)    # H     -> H      (packed: Wp -> Wp)
    h = lin_relu(h, w2_ref, b2_ref)    # H     -> H//2   (packed: Wp -> Wp/2)
    h = lin_relu(h, w3_ref, b3_ref)    # H//2  -> H
    h = lin_relu(h, w4_ref, b4_ref)    # H     -> H

    # Grouped BertLayerNorm: each H-wide group inside the packed 128-lane row is
    # an independent LayerNorm.  Group means are computed lane-aligned via an f32
    # matmul with the group-averaging matrix (gsum[i, j] = 1/H iff same group).
    gsum = gsum_ref[...]
    mu = jnp.dot(h, gsum, preferred_element_type=jnp.float32)
    c = h - mu
    var = jnp.dot(c * c, gsum, preferred_element_type=jnp.float32)
    normed = c * jax.lax.rsqrt(var + LN_EPS)
    o_ref[...] = (normed * gamma_ref[...] + beta_ref[...]).astype(o_ref.dtype)


def _round_up(x, m):
    return ((x + m - 1) // m) * m


def noise_generator_pallas(noise2d, params, *, block_rows_max=512):
    """noise2d: (M, H) f32 standard-normal noise.  params: plain f32 weights
    (w_i: (in, out), b_i: (out,), gamma/beta: (H,)).  Returns (M, H) f32."""
    M, H = noise2d.shape

    # Lane-packing factor: put P independent H-wide feature groups on 128 lanes.
    P = 128 // H if (H < 128 and 128 % H == 0) else 1
    Wp = P * H

    # ---- pack parameters (block-diagonal -> lane-dense matmuls), bf16 weights.
    def bd(w):                          # (in, out) f32 -> (P*in, P*out) bf16
        return jnp.kron(jnp.eye(P, dtype=w.dtype), w).astype(jnp.bfloat16)

    def tile_row(v):                    # (d,) -> (1, P*d) f32
        return jnp.tile(v, P).reshape(1, -1).astype(jnp.float32)

    ws = [bd(params[f"w{i}"]) for i in (1, 2, 3, 4)]
    bs = [tile_row(params[f"b{i}"]) for i in (1, 2, 3, 4)]
    gamma = tile_row(params["gamma"])
    beta = tile_row(params["beta"])
    grp = jnp.arange(Wp) // H
    gsum = (grp[:, None] == grp[None, :]).astype(jnp.float32) / H   # (Wp, Wp)

    # ---- row padding / packing: (M, H) -> (Mp, Wp), Mp a multiple of the tile.
    Mp = pl.cdiv(M, P)
    Mp = _round_up(Mp, 8)                          # sublane alignment
    block_rows = min(block_rows_max, Mp)
    if Mp >= 16 and pl.cdiv(Mp, block_rows) == 1:
        # keep >= 2 grid steps so v7x can shard the row axis over both TCs
        block_rows = _round_up(pl.cdiv(Mp, 2), 8)
    grid_n = pl.cdiv(Mp, block_rows)
    Mp = grid_n * block_rows
    M_pad = Mp * P

    x = jnp.pad(noise2d.astype(jnp.float32), ((0, M_pad - M), (0, 0)))
    xp = x.reshape(Mp, Wp)      # row-major: P consecutive rows -> 1 packed row

    # ---- BlockSpecs: row-tiled activations, fully-resident (constant) params.
    def const_spec(arr):
        return pl.BlockSpec(arr.shape, lambda i: (0, 0))

    in_specs = [pl.BlockSpec((block_rows, Wp), lambda i: (i, 0))]
    const_args = (ws[0], bs[0], ws[1], bs[1], ws[2], bs[2], ws[3], bs[3],
                  gsum, gamma, beta)
    in_specs += [const_spec(a) for a in const_args]

    out = pl.pallas_call(
        _noise_generator_kernel,
        out_shape=jax.ShapeDtypeStruct((Mp, Wp), jnp.float32),
        grid_spec=pltpu.PrefetchScalarGridSpec(
            num_scalar_prefetch=0,
            grid=(grid_n,),
            in_specs=in_specs,
            out_specs=pl.BlockSpec((block_rows, Wp), lambda i: (i, 0)),
        ),
        compiler_params=pltpu.CompilerParams(
            dimension_semantics=("parallel",),
            vmem_limit_bytes=48 * 1024 * 1024,   # > v5e's 16 MiB scoped default,
                                                 # < v7x's 64 MiB physical VMEM
        ),
    )(xp, *const_args)

    return out.reshape(M_pad, H)[:M, :]


def make_params(hidden_size, key):
    """Deterministic synthetic parameters.
    FCNet dims = [H, H, H//2, H, H] -> 4 weight-normed Linear layers.
    weight_norm(dim=None): W_eff = g * V / ||V||_F."""
    H = hidden_size
    dims = [H, H, H // 2, H, H]
    params = {}
    keys = jax.random.split(key, 12)
    ki = 0
    for li in range(4):
        d_in, d_out = dims[li], dims[li + 1]
        v = jax.random.normal(keys[ki], (d_out, d_in), jnp.float32) * 0.1
        ki += 1
        g = 1.0 + 0.05 * jax.random.normal(keys[ki], (), jnp.float32)
        ki += 1
        b = 0.01 * jax.random.normal(keys[ki], (d_out,), jnp.float32)
        ki += 1
        w_eff = g * v / jnp.sqrt(jnp.sum(v * v))       # weight_norm, dim=None
        params[f"w{li + 1}"] = jnp.transpose(w_eff)     # (in, out) for x @ W
        params[f"b{li + 1}"] = b
    # BertLayerNorm: weight=1, bias=0 at init (kept deterministic).
    params["gamma"] = jnp.ones((H,), jnp.float32)
    params["beta"] = jnp.zeros((H,), jnp.float32)
    return params


def reference_forward(noise2d, params):
    h = noise2d
    for li in range(4):
        w, b = params[f"w{li + 1}"], params[f"b{li + 1}"]
        h = jnp.maximum(jnp.dot(h, w, precision=jax.lax.Precision.HIGHEST) + b, 0.0)
    mu = jnp.mean(h, axis=-1, keepdims=True)
    var = jnp.mean((h - mu) ** 2, axis=-1, keepdims=True)
    return (h - mu) * jax.lax.rsqrt(var + LN_EPS) * params["gamma"] + params["beta"]


if __name__ == "__main__":
    H = 32            # hidden_size
    B, S_len = 2, 8   # input_feat: (batch, seq, hidden)

    root = jax.random.PRNGKey(0)
    k_in, k_noise, k_param = jax.random.split(root, 3)

    # input_feat: only its shape/dtype is used by the module's forward.
    input_feat = jax.random.normal(k_in, (B, S_len, H), jnp.float32)

    # torch: new_feat = zeros_like(input); nn.init.normal_(new_feat)
    noise = jax.random.normal(k_noise, input_feat.shape, jnp.float32)

    params = make_params(H, k_param)

    noise2d = noise.reshape(B * S_len, H)
    out2d = noise_generator_pallas(noise2d, params)
    out = out2d.reshape(B, S_len, H)
    jax.block_until_ready(out)

    ref = reference_forward(noise2d, params).reshape(B, S_len, H)
    # bf16 MXU path for the linear layers -> looser tolerance than pure f32.
    np.testing.assert_allclose(np.asarray(out), np.asarray(ref),
                               rtol=2e-2, atol=2e-2)

    print("KERNEL_OK")
</pallas_src>

<mosaic_0001>
module attributes {stable_mosaic.version = 11 : i64} {
  func.func @_noise_generator_kernel(%arg0: i32, %arg1: memref<8x128xf32, #tpu.memory_space<vmem>>, %arg2: memref<128x128xbf16, #tpu.memory_space<vmem>>, %arg3: memref<1x128xf32, #tpu.memory_space<vmem>>, %arg4: memref<128x64xbf16, #tpu.memory_space<vmem>>, %arg5: memref<1x64xf32, #tpu.memory_space<vmem>>, %arg6: memref<64x128xbf16, #tpu.memory_space<vmem>>, %arg7: memref<1x128xf32, #tpu.memory_space<vmem>>, %arg8: memref<128x128xbf16, #tpu.memory_space<vmem>>, %arg9: memref<1x128xf32, #tpu.memory_space<vmem>>, %arg10: memref<128x128xf32, #tpu.memory_space<vmem>>, %arg11: memref<1x128xf32, #tpu.memory_space<vmem>>, %arg12: memref<1x128xf32, #tpu.memory_space<vmem>>, %arg13: memref<8x128xf32, #tpu.memory_space<vmem>>) attributes {dimension_semantics = [#tpu.dimension_semantics<parallel>], iteration_bounds = array<i64: 1>, scalar_prefetch = 0 : i64, scratch_operands = 0 : i64, tpu.core_type = #tpu.core_type<tc>, window_params = [{transform_indices = @transform_0, window_bounds = array<i64: 8, 128>}, {pipeline_mode = #tpu.pipeline_mode<synchronous>, transform_indices = @transform_1, window_bounds = array<i64: 128, 128>}, {pipeline_mode = #tpu.pipeline_mode<synchronous>, transform_indices = @transform_2, window_bounds = array<i64: 1, 128>}, {pipeline_mode = #tpu.pipeline_mode<synchronous>, transform_indices = @transform_3, window_bounds = array<i64: 128, 64>}, {pipeline_mode = #tpu.pipeline_mode<synchronous>, transform_indices = @transform_4, window_bounds = array<i64: 1, 64>}, {pipeline_mode = #tpu.pipeline_mode<synchronous>, transform_indices = @transform_5, window_bounds = array<i64: 64, 128>}, {pipeline_mode = #tpu.pipeline_mode<synchronous>, transform_indices = @transform_6, window_bounds = array<i64: 1, 128>}, {pipeline_mode = #tpu.pipeline_mode<synchronous>, transform_indices = @transform_7, window_bounds = array<i64: 128, 128>}, {pipeline_mode = #tpu.pipeline_mode<synchronous>, transform_indices = @transform_8, window_bounds = array<i64: 1, 128>}, {pipeline_mode = #tpu.pipeline_mode<synchronous>, transform_indices = @transform_9, window_bounds = array<i64: 128, 128>}, {pipeline_mode = #tpu.pipeline_mode<synchronous>, transform_indices = @transform_10, window_bounds = array<i64: 1, 128>}, {pipeline_mode = #tpu.pipeline_mode<synchronous>, transform_indices = @transform_11, window_bounds = array<i64: 1, 128>}, {transform_indices = @transform_12, window_bounds = array<i64: 8, 128>}]} {
    %c0 = arith.constant 0 : index
    %c0_0 = arith.constant 0 : index
    %0 = vector.load %arg1[%c0, %c0_0] : memref<8x128xf32, #tpu.memory_space<vmem>>, vector<8x128xf32>
    %1 = arith.truncf %0 : vector<8x128xf32> to vector<8x128xbf16>
    %c0_1 = arith.constant 0 : index
    %c0_2 = arith.constant 0 : index
    %2 = vector.load %arg2[%c0_1, %c0_2] : memref<128x128xbf16, #tpu.memory_space<vmem>>, vector<128x128xbf16>
    %cst = arith.constant dense<0.000000e+00> : vector<8x128xf32>
    %3 = tpu.matmul %1, %2, %cst {dimension_numbers = #tpu.dot_dimension_numbers<[1], [0], [0], [1], [0, 0, 1, 1], [], []>} : vector<8x128xbf16>, vector<128x128xbf16>, vector<8x128xf32> -> vector<8x128xf32>
    %c0_3 = arith.constant 0 : index
    %c0_4 = arith.constant 0 : index
    %4 = vector.load %arg3[%c0_3, %c0_4] : memref<1x128xf32, #tpu.memory_space<vmem>>, vector<1x128xf32>
    %5 = vector.broadcast %4 : vector<1x128xf32> to vector<8x128xf32>
    %6 = arith.addf %3, %5 : vector<8x128xf32>
    %cst_5 = arith.constant 0.000000e+00 : f32
    %7 = vector.broadcast %cst_5 : f32 to vector<8x128xf32>
    %8 = arith.maximumf %6, %7 : vector<8x128xf32>
    %9 = arith.truncf %8 : vector<8x128xf32> to vector<8x128xbf16>
    %c0_6 = arith.constant 0 : index
    %c0_7 = arith.constant 0 : index
    %10 = vector.load %arg4[%c0_6, %c0_7] : memref<128x64xbf16, #tpu.memory_space<vmem>>, vector<128x64xbf16>
    %cst_8 = arith.constant dense<0.000000e+00> : vector<8x64xf32>
    %11 = tpu.matmul %9, %10, %cst_8 {dimension_numbers = #tpu.dot_dimension_numbers<[1], [0], [0], [1], [0, 0, 1, 1], [], []>} : vector<8x128xbf16>, vector<128x64xbf16>, vector<8x64xf32> -> vector<8x64xf32>
    %c0_9 = arith.constant 0 : index
    %c0_10 = arith.constant 0 : index
    %12 = vector.load %arg5[%c0_9, %c0_10] : memref<1x64xf32, #tpu.memory_space<vmem>>, vector<1x64xf32>
    %13 = vector.broadcast %12 : vector<1x64xf32> to vector<8x64xf32>
    %14 = arith.addf %11, %13 : vector<8x64xf32>
    %cst_11 = arith.constant 0.000000e+00 : f32
    %15 = vector.broadcast %cst_11 : f32 to vector<8x64xf32>
    %16 = arith.maximumf %14, %15 : vector<8x64xf32>
    %17 = arith.truncf %16 : vector<8x64xf32> to vector<8x64xbf16>
    %c0_12 = arith.constant 0 : index
    %c0_13 = arith.constant 0 : index
    %18 = vector.load %arg6[%c0_12, %c0_13] : memref<64x128xbf16, #tpu.memory_space<vmem>>, vector<64x128xbf16>
    %cst_14 = arith.constant dense<0.000000e+00> : vector<8x128xf32>
    %19 = tpu.matmul %17, %18, %cst_14 {dimension_numbers = #tpu.dot_dimension_numbers<[1], [0], [0], [1], [0, 0, 1, 1], [], []>} : vector<8x64xbf16>, vector<64x128xbf16>, vector<8x128xf32> -> vector<8x128xf32>
    %c0_15 = arith.constant 0 : index
    %c0_16 = arith.constant 0 : index
    %20 = vector.load %arg7[%c0_15, %c0_16] : memref<1x128xf32, #tpu.memory_space<vmem>>, vector<1x128xf32>
    %21 = vector.broadcast %20 : vector<1x128xf32> to vector<8x128xf32>
    %22 = arith.addf %19, %21 : vector<8x128xf32>
    %cst_17 = arith.constant 0.000000e+00 : f32
    %23 = vector.broadcast %cst_17 : f32 to vector<8x128xf32>
    %24 = arith.maximumf %22, %23 : vector<8x128xf32>
    %25 = arith.truncf %24 : vector<8x128xf32> to vector<8x128xbf16>
    %c0_18 = arith.constant 0 : index
    %c0_19 = arith.constant 0 : index
    %26 = vector.load %arg8[%c0_18, %c0_19] : memref<128x128xbf16, #tpu.memory_space<vmem>>, vector<128x128xbf16>
    %cst_20 = arith.constant dense<0.000000e+00> : vector<8x128xf32>
    %27 = tpu.matmul %25, %26, %cst_20 {dimension_numbers = #tpu.dot_dimension_numbers<[1], [0], [0], [1], [0, 0, 1, 1], [], []>} : vector<8x128xbf16>, vector<128x128xbf16>, vector<8x128xf32> -> vector<8x128xf32>
    %c0_21 = arith.constant 0 : index
    %c0_22 = arith.constant 0 : index
    %28 = vector.load %arg9[%c0_21, %c0_22] : memref<1x128xf32, #tpu.memory_space<vmem>>, vector<1x128xf32>
    %29 = vector.broadcast %28 : vector<1x128xf32> to vector<8x128xf32>
    %30 = arith.addf %27, %29 : vector<8x128xf32>
    %cst_23 = arith.constant 0.000000e+00 : f32
    %31 = vector.broadcast %cst_23 : f32 to vector<8x128xf32>
    %32 = arith.maximumf %30, %31 : vector<8x128xf32>
    %c0_24 = arith.constant 0 : index
    %c0_25 = arith.constant 0 : index
    %33 = vector.load %arg10[%c0_24, %c0_25] : memref<128x128xf32, #tpu.memory_space<vmem>>, vector<128x128xf32>
    %cst_26 = arith.constant dense<0.000000e+00> : vector<8x128xf32>
    %34 = tpu.matmul %32, %33, %cst_26 {dimension_numbers = #tpu.dot_dimension_numbers<[1], [0], [0], [1], [0, 0, 1, 1], [], []>} : vector<8x128xf32>, vector<128x128xf32>, vector<8x128xf32> -> vector<8x128xf32>
    %35 = arith.subf %32, %34 : vector<8x128xf32>
    %36 = arith.mulf %35, %35 : vector<8x128xf32>
    %cst_27 = arith.constant dense<0.000000e+00> : vector<8x128xf32>
    %37 = tpu.matmul %36, %33, %cst_27 {dimension_numbers = #tpu.dot_dimension_numbers<[1], [0], [0], [1], [0, 0, 1, 1], [], []>} : vector<8x128xf32>, vector<128x128xf32>, vector<8x128xf32> -> vector<8x128xf32>
    %cst_28 = arith.constant 9.99999996E-13 : f32
    %38 = vector.broadcast %cst_28 : f32 to vector<8x128xf32>
    %39 = arith.addf %37, %38 : vector<8x128xf32>
    %40 = math.rsqrt %39 : vector<8x128xf32>
    %41 = arith.mulf %35, %40 : vector<8x128xf32>
    %c0_29 = arith.constant 0 : index
    %c0_30 = arith.constant 0 : index
    %42 = vector.load %arg11[%c0_29, %c0_30] : memref<1x128xf32, #tpu.memory_space<vmem>>, vector<1x128xf32>
    %43 = vector.broadcast %42 : vector<1x128xf32> to vector<8x128xf32>
    %44 = arith.mulf %41, %43 : vector<8x128xf32>
    %c0_31 = arith.constant 0 : index
    %c0_32 = arith.constant 0 : index
    %45 = vector.load %arg12[%c0_31, %c0_32] : memref<1x128xf32, #tpu.memory_space<vmem>>, vector<1x128xf32>
    %46 = vector.broadcast %45 : vector<1x128xf32> to vector<8x128xf32>
    %47 = arith.addf %44, %46 : vector<8x128xf32>
    %c0_33 = arith.constant 0 : index
    %c0_34 = arith.constant 0 : index
    %48 = vector.load %arg13[%c0_33, %c0_34] : memref<8x128xf32, #tpu.memory_space<vmem>>, vector<8x128xf32>
    tpu.vector_store %arg13[%c0_33, %c0_34], %47 {strides = array<i32>} : memref<8x128xf32, #tpu.memory_space<vmem>>, vector<8x128xf32>,
    return
  }
  func.func @transform_0(%arg0: i32) -> (i32, i32) {
    %c0_i32 = arith.constant 0 : i32
    %c0_i32_0 = arith.constant 0 : i32
    return %arg0, %c0_i32 : i32, i32
  }
  func.func @transform_1(%arg0: i32) -> (i32, i32) {
    %c0_i32 = arith.constant 0 : i32
    %c0_i32_0 = arith.constant 0 : i32
    %c0_i32_1 = arith.constant 0 : i32
    return %c0_i32, %c0_i32_0 : i32, i32
  }
  func.func @transform_2(%arg0: i32) -> (i32, i32) {
    %c0_i32 = arith.constant 0 : i32
    %c0_i32_0 = arith.constant 0 : i32
    %c0_i32_1 = arith.constant 0 : i32
    return %c0_i32, %c0_i32_0 : i32, i32
  }
  func.func @transform_3(%arg0: i32) -> (i32, i32) {
    %c0_i32 = arith.constant 0 : i32
    %c0_i32_0 = arith.constant 0 : i32
    %c0_i32_1 = arith.constant 0 : i32
    return %c0_i32, %c0_i32_0 : i32, i32
  }
  func.func @transform_4(%arg0: i32) -> (i32, i32) {
    %c0_i32 = arith.constant 0 : i32
    %c0_i32_0 = arith.constant 0 : i32
    %c0_i32_1 = arith.constant 0 : i32
    return %c0_i32, %c0_i32_0 : i32, i32
  }
  func.func @transform_5(%arg0: i32) -> (i32, i32) {
    %c0_i32 = arith.constant 0 : i32
    %c0_i32_0 = arith.constant 0 : i32
    %c0_i32_1 = arith.constant 0 : i32
    return %c0_i32, %c0_i32_0 : i32, i32
  }
  func.func @transform_6(%arg0: i32) -> (i32, i32) {
    %c0_i32 = arith.constant 0 : i32
    %c0_i32_0 = arith.constant 0 : i32
    %c0_i32_1 = arith.constant 0 : i32
    return %c0_i32, %c0_i32_0 : i32, i32
  }
  func.func @transform_7(%arg0: i32) -> (i32, i32) {
    %c0_i32 = arith.constant 0 : i32
    %c0_i32_0 = arith.constant 0 : i32
    %c0_i32_1 = arith.constant 0 : i32
    return %c0_i32, %c0_i32_0 : i32, i32
  }
  func.func @transform_8(%arg0: i32) -> (i32, i32) {
    %c0_i32 = arith.constant 0 : i32
    %c0_i32_0 = arith.constant 0 : i32
    %c0_i32_1 = arith.constant 0 : i32
    return %c0_i32, %c0_i32_0 : i32, i32
  }
  func.func @transform_9(%arg0: i32) -> (i32, i32) {
    %c0_i32 = arith.constant 0 : i32
    %c0_i32_0 = arith.constant 0 : i32
    %c0_i32_1 = arith.constant 0 : i32
    return %c0_i32, %c0_i32_0 : i32, i32
  }
  func.func @transform_10(%arg0: i32) -> (i32, i32) {
    %c0_i32 = arith.constant 0 : i32
    %c0_i32_0 = arith.constant 0 : i32
    %c0_i32_1 = arith.constant 0 : i32
    return %c0_i32, %c0_i32_0 : i32, i32
  }
  func.func @transform_11(%arg0: i32) -> (i32, i32) {
    %c0_i32 = arith.constant 0 : i32
    %c0_i32_0 = arith.constant 0 : i32
    %c0_i32_1 = arith.constant 0 : i32
    return %c0_i32, %c0_i32_0 : i32, i32
  }
  func.func @transform_12(%arg0: i32) -> (i32, i32) {
    %c0_i32 = arith.constant 0 : i32
    %c0_i32_0 = arith.constant 0 : i32
    return %arg0, %c0_i32 : i32, i32
  }
}

</mosaic_0001>

<bundles_post_ra>
// kernel: tpu_custom_call.1
= control target key start
LH: loop header
LB: loop body
LE: loop exit
PB: predicated region body
PF: predicated region fallthrough
CT: control target
= control target key end

     0   :  { %17 = vsyncpa [#allocation3], 0  ;;  %s913_s0 = inlined_call_operand.hbm [shape: f32[8,128], index: 0, kind: input, shape index: {}]   ;;  %s914_s1 = inlined_call_operand.vmem [shape: bf16[128,128], index: 1, kind: input, shape index: {}]   ;;  %s915_s2 = inlined_call_operand.vmem [shape: f32[1,128], index: 2, kind: input, shape index: {}]   ;;  %s916_s3 = inlined_call_operand.vmem [shape: bf16[128,64], index: 3, kind: input, shape index: {}]   ;;  %s917_s4 = inlined_call_operand.vmem [shape: f32[1,64], index: 4, kind: input, shape index: {}]   ;;  %s918_s5 = inlined_call_operand.vmem [shape: bf16[64,128], index: 5, kind: input, shape index: {}]   ;;  %s919_s6 = inlined_call_operand.vmem [shape: f32[1,128], index: 6, kind: input, shape index: {}]   ;;  %s920_s7 = inlined_call_operand.hbm [shape: bf16[128,128], index: 7, kind: input, shape index: {}]   ;;  %s921_s8 = inlined_call_operand.vmem [shape: f32[1,128], index: 8, kind: input, shape index: {}]   ;;  %s922_s9 = inlined_call_operand.hbm [shape: f32[128,128], index: 9, kind: input, shape index: {}]   ;;  %s923_s10 = inlined_call_operand.vmem [shape: f32[1,128], index: 10, kind: input, shape index: {}]   ;;  %s924_s11 = inlined_call_operand.vmem [shape: f32[1,128], index: 11, kind: input, shape index: {}]   ;;  %s925_s12 = inlined_call_operand.hbm [shape: f32[8,128], index: 12, kind: output, shape index: {}]  }
   0x1   :  { %18 = vsyncpa [#allocation6], 0  ;;  %s47_s23 = sshll.u32 %s920_s7, 4  ;;  %s48_s23 = int_to_ptr.hbm [resolvable:$true] %s47_s23 }
   0x2   :  { %19 = vsyncpa [#allocation4], 0  ;;  %s750_s24 = smov [#allocation5]   ;;  %s25_s28 = sshll.u32 %s913_s0, 4  ;;  %s26_s28 = int_to_ptr.hbm [resolvable:$true] %s25_s28 }
   0x3   :  { %s49_s25 = sshll.u32 %s750_s24, 4  ;;  %s751_s29 = smov 64   ;;  %s50_s25 = int_to_ptr.vmem [resolvable:$true] %s49_s25 }
   0x4   :  { %s752_s30 = smov 4   ;;  %s753_s13 = smov [#allocation2]  }
   0x5   :  { %55 = dma.hbm_to_vmem [thread:$0]  %s48_s23, 1024, %s50_s25, [#allocation6], %s751_s29, %s751_s29, %s752_s30  }
   0x6   :  { %s27_s14 = sshll.u32 %s753_s13, 4  ;;  %s62_s17 = sshll.u32 %s922_s9, 4  ;;  %s28_s14 = int_to_ptr.vmem [resolvable:$true] %s27_s14  ;;  %s63_s17 = int_to_ptr.hbm [resolvable:$true] %s62_s17 }
   0x7   :  { %30 = dma.hbm_to_vmem [thread:$0]  %s26_s28, 128, %s28_s14, [#allocation3]  }
   0x8   :  { %s754_s7 = smov [#allocation7]   ;;  %s755_s19 = smov 128  }
   0x9   :  { %s64_s18 = sshll.u32 %s754_s7, 4  ;;  %s756_s20 = smov 8   ;;  %s65_s18 = int_to_ptr.vmem [resolvable:$true] %s64_s18 }
   0xa   :  { %70 = dma.hbm_to_vmem [thread:$0]  %s63_s17, 2048, %s65_s18, [#allocation6], %s755_s19, %s755_s19, %s756_s20  }
   0xb   :  { %744 = dma.done.wait [#allocation3], 128  }
   0xc   :  { %745 = vsyncadd [#allocation3], 4294967168 }
   0xd   :  { %746 = dma.done.wait [#allocation6], 3072  }
   0xe   :  { %747 = vsyncadd [#allocation6], 4294964224  ;;  %v611_v0 = vld [vmem:[%s914_s1 + $0x38] sm:$0xff]  ;;  %v610_v1 = vld [vmem:[%s914_s1 + $0x30] sm:$0xff]  ;;  %vm292_vm0 = vcmask 523264   ;;  %s757_s9 = smov [#allocation8]  }
   0xf   :  { %158 = vmatpush.bf16.msra.mxu0 %v611_v0  ;;  %v619_v2 = vld [vmem:[%s916_s3 + $0x38] sm:$0xff]  ;;  %v609_v3 = vld [vmem:[%s914_s1 + $0x28] sm:$0xff]  ;;  %v618_v4 = vld [vmem:[%s916_s3 + $0x30] sm:$0xff]  ;;  %s478_s23 = sshll.u32 %s757_s9, 4  ;;  %s480_s26 = sshll.u32 %s925_s12, 4  ;;  %s479_s23 = int_to_ptr.vmem [resolvable:$true] %s478_s23  ;;  %s481_s26 = int_to_ptr.hbm [resolvable:$true] %s480_s26 }
  0x10   :  { %241 = vmatpush.bf16.msra.mxu1 %v619_v2  ;;  %v617_v5 = vld [vmem:[%s916_s3 + $0x28] sm:$0xff]  ;;  %v608_v6 = vld [vmem:[%s914_s1 + $0x20] sm:$0xff]  ;;  %v607_v8 = vld [vmem:[%s914_s1 + $0x18] sm:$0xff] }
  0x11   :  { %v616_v7 = vld [vmem:[%s916_s3 + $0x20] sm:$0xff]  ;;  %v615_v9 = vld [vmem:[%s916_s3 + $0x18] sm:$0xff]  ;;  %v606_v10 = vld [vmem:[%s914_s1 + $0x10] sm:$0xff] }
  0x12   :  { %v614_v11 = vld [vmem:[%s916_s3 + $0x10] sm:$0xff]  ;;  %v605_v12 = vld [vmem:[%s914_s1 + $0x8] sm:$0xff]  ;;  %v604_v13 = vld [vmem:[%s914_s1] sm:$0xff] }
  0x13   :  { %159 = vmatpush.bf16.msra.mxu0 %v610_v1  ;;  %v88_v14 = vld [vmem:[#allocation2] sm:$0xff]  ;;  %v613_v16 = vld [vmem:[%s916_s3 + $0x8] sm:$0xff]  ;;  %v623_v18 = vld [vmem:[%s918_s5 + $0x18] sm:$0xff] }
  0x14   :  { %242 = vmatpush.bf16.msra.mxu1 %v618_v4  ;;  %v89_v15 = vpack.c.bf16 %v88_v14, %v88_v14  ;;  %v612_v17 = vld [vmem:[%s916_s3] sm:$0xff]  ;;  %300 = vmatpush.bf16.msra.mxu2 %v623_v18  ;;  %v622_v19 = vld [vmem:[%s918_s5 + $0x10] sm:$0xff]  ;;  %v621_v26 = vld [vmem:[%s918_s5 + $0x8] sm:$0xff] }
  0x15   :  { %v640_v20 = vld [vmem:[%s915_s2] ss:$0 sm:$0xff]  ;;  %v630_v29 = vld [vmem:[#allocation5 + $0x30] sm:$0xff]  ;;  %v629_v30 = vld [vmem:[#allocation5 + $0x28] sm:$0xff] }
  0x16   :  { %v620_v27 = vld [vmem:[%s918_s5] sm:$0xff]  ;;  %v628_v31 = vld [vmem:[#allocation5 + $0x20] sm:$0xff]  ;;  %v626_v33 = vld [vmem:[#allocation5 + $0x10] sm:$0xff] }
  0x17   :  { %160 = vmatpush.bf16.msra.mxu0 %v609_v3  ;;  %v631_v28 = vld [vmem:[#allocation5 + $0x38] sm:$0xff]  ;;  %v625_v40 = vld [vmem:[#allocation5 + $0x8] sm:$0xff]  ;;  %v624_v41 = vld [vmem:[#allocation5] sm:$0xff] }
  0x18   :  { %243 = vmatpush.bf16.msra.mxu1 %v617_v5  ;;  %301 = vmatpush.bf16.msra.mxu2 %v622_v19  ;;  %v627_v32 = vld [vmem:[#allocation5 + $0x18] sm:$0xff]  ;;  %v407_v43 = vld [vmem:[#allocation7 + $0x70] sm:$0xff]  ;;  %v406_v44 = vld [vmem:[#allocation7 + $0x68] sm:$0xff] }
  0x19   :  { %379 = vmatpush.bf16.msra.mxu3 %v631_v28  ;;  %v641_v34 = vld [vmem:[%s917_s4] ss:$0 sm:$0xff]  ;;  %v405_v45 = vld [vmem:[#allocation7 + $0x60] sm:$0xff]  ;;  %v403_v47 = vld [vmem:[#allocation7 + $0x50] sm:$0xff] }
  0x1a   :  { %v408_v42 = vld [vmem:[#allocation7 + $0x78] sm:$0xff]  ;;  %v402_v48 = vld [vmem:[#allocation7 + $0x48] sm:$0xff]  ;;  %v401_v49 = vld [vmem:[#allocation7 + $0x40] sm:$0xff] }
  0x1b   :  { %161 = vmatpush.bf16.msra.mxu0 %v608_v6  ;;  %v404_v46 = vld [vmem:[#allocation7 + $0x58] sm:$0xff]  ;;  %v399_v51 = vld [vmem:[#allocation7 + $0x30] sm:$0xff]  ;;  %v398_v52 = vld [vmem:[#allocation7 + $0x28] sm:$0xff] }
  0x1c   :  { %244 = vmatpush.bf16.msra.mxu1 %v616_v7  ;;  %302 = vmatpush.bf16.msra.mxu2 %v621_v26  ;;  %v400_v50 = vld [vmem:[#allocation7 + $0x38] sm:$0xff]  ;;  %v397_v53 = vld [vmem:[#allocation7 + $0x20] sm:$0xff]  ;;  %v395_v61 = vld [vmem:[#allocation7 + $0x10] sm:$0xff] }
  0x1d   :  { %380 = vmatpush.bf16.msra.mxu3 %v630_v29  ;;  %v642_v54 = vld [vmem:[%s919_s6] ss:$0 sm:$0xff]  ;;  %v394_v62 = vld [vmem:[#allocation7 + $0x8] sm:$0xff]  ;;  %v393_v63 = vld [vmem:[#allocation7] sm:$0xff] }
  0x1e   :  { %v396_v55 = vld [vmem:[#allocation7 + $0x18] sm:$0xff] }
  0x1f   :  { %162 = vmatpush.bf16.msra.mxu0 %v607_v8  ;;  %v643_v0 = vld [vmem:[%s921_s8] ss:$0 sm:$0xff] }
  0x20   :  { %245 = vmatpush.bf16.msra.mxu1 %v615_v9  ;;  %303 = vmatpush.bf16.msra.mxu2 %v620_v27  ;;  %v645_v19 = vld [vmem:[%s924_s11] ss:$0 sm:$0xff] }
  0x21   :  { %381 = vmatpush.bf16.msra.mxu3 %v629_v30 }
  0x23   :  { %163 = vmatpush.bf16.msra.mxu0 %v606_v10 }
  0x24   :  { %246 = vmatpush.bf16.msra.mxu1 %v614_v11  ;;  %409 = vmatpush.msrb.mxu2 %v408_v42 }
  0x25   :  { %382 = vmatpush.bf16.msra.mxu3 %v628_v31 }
  0x26   :  { %410 = vmatpush.msrb.mxu2 %v407_v43 }
  0x27   :  { %164 = vmatpush.bf16.msra.mxu0 %v605_v12 }
  0x28   :  { %247 = vmatpush.bf16.msra.mxu1 %v613_v16  ;;  %411 = vmatpush.msrb.mxu2 %v406_v44  ;;  %v644_v16 = vld [vmem:[%s923_s10] ss:$0 sm:$0xff] }
  0x29   :  { %383 = vmatpush.bf16.msra.mxu3 %v627_v32 }
  0x2a   :  { %412 = vmatpush.msrb.mxu2 %v405_v45 }
  0x2b   :  { %165 = vmatpush.bf16.msra.mxu0 %v604_v13 }
  0x2c   :  { %248 = vmatpush.bf16.msra.mxu1 %v612_v17  ;;  %413 = vmatpush.msrb.mxu2 %v404_v46 }
  0x2d   :  { %384 = vmatpush.bf16.msra.mxu3 %v626_v33 }
  0x2e   :  { %166 = vmatmul.bf16.vlgmr.msra.gmra.mxu0 %v89_v15  ;;  %414 = vmatpush.msrb.mxu2 %v403_v47 }
  0x2f   :  { %431 = vmatpush.msrb.mxu0 %v408_v42 }
  0x30   :  { %415 = vmatpush.msrb.mxu2 %v402_v48 }
  0x31   :  { %385 = vmatpush.bf16.msra.mxu3 %v625_v40  ;;  %432 = vmatpush.msrb.mxu0 %v407_v43 }
  0x32   :  { %416 = vmatpush.msrb.mxu2 %v401_v49 }
  0x33   :  { %433 = vmatpush.msrb.mxu0 %v406_v44 }
  0x34   :  { %417 = vmatpush.msrb.mxu2 %v400_v50 }
  0x35   :  { %386 = vmatpush.bf16.msra.mxu3 %v624_v41  ;;  %434 = vmatpush.msrb.mxu0 %v405_v45 }
  0x36   :  { %418 = vmatpush.msrb.mxu2 %v399_v51 }
  0x37   :  { %435 = vmatpush.msrb.mxu0 %v404_v46 }
  0x38   :  { %419 = vmatpush.msrb.mxu2 %v398_v52 }
  0x39   :  { %436 = vmatpush.msrb.mxu0 %v403_v47 }
  0x3a   :  { %420 = vmatpush.msrb.mxu2 %v397_v53 }
  0x3b   :  { %437 = vmatpush.msrb.mxu0 %v402_v48 }
  0x3c   :  { %421 = vmatpush.msrb.mxu2 %v396_v55 }
  0x3d   :  { %438 = vmatpush.msrb.mxu0 %v401_v49 }
  0x3e   :  { %422 = vmatpush.msrb.mxu2 %v395_v61 }
  0x3f   :  { %439 = vmatpush.msrb.mxu0 %v400_v50 }
  0x40   :  { %423 = vmatpush.msrb.mxu2 %v394_v62 }
  0x41   :  { %440 = vmatpush.msrb.mxu0 %v399_v51 }
  0x42   :  { %424 = vmatpush.msrb.mxu2 %v393_v63 }
  0x43   :  { %441 = vmatpush.msrb.mxu0 %v398_v52 }
  0x45   :  { %442 = vmatpush.msrb.mxu0 %v397_v53 }
  0x47   :  { %443 = vmatpush.msrb.mxu0 %v396_v55 }
  0x49   :  { %444 = vmatpush.msrb.mxu0 %v395_v61 }
  0x4b   :  { %445 = vmatpush.msrb.mxu0 %v394_v62 }
  0x4d   :  { %446 = vmatpush.msrb.mxu0 %v393_v63 }
  0xab   :  { %v167_v21 = vpop.f32.mrf.mxu0 }
  0xac   :  { %v168_v22 = vadd.f32 %v640_v20, %v167_v21 }
  0xae   :  { %v171_v23 = vmax.f32 %v168_v22, 0.0 }
  0xb0   :  { %v172_v24 = vpack.c.bf16 %v171_v23, %v171_v23 }
  0xb2   :  { %249 = vmatmul.bf16.vlgmr.msra.gmra.mxu1 %v172_v24 }
  0xb3   :  { %v169_v25 = vpop.f32.mrf.mxu0 }
 0x12f   :  { %v250_v35 = vpop.f32.mrf.mxu1 }
 0x130   :  { %v251_v36 = vadd.f32 %v641_v34, %v250_v35 }
 0x132   :  { %v254_v37 = vmax.f32 %v251_v36, 0.0 }
 0x134   :  { %v255_v38 = vpack.c.bf16 %v254_v37, %v254_v37 }
 0x136   :  { %571 = vmatmul.msk.bf16.vlgmr.msra.gmra.mxu2 %vm292_vm0, %v255_v38 }
 0x137   :  { %v252_v39 = vpop.f32.mrf.mxu1 }
 0x1b9   :  { %v305_v56 = vpop.f32.mrf.mxu2 }
 0x1ba   :  { %v306_v57 = vadd.f32 %v642_v54, %v305_v56 }
 0x1bc   :  { %v309_v58 = vmax.f32 %v306_v57, 0.0 }
 0x1be   :  { %v310_v59 = vpack.c.bf16 %v309_v58, %v309_v58 }
 0x1c0   :  { %387 = vmatmul.bf16.vlgmr.msra.gmra.mxu3 %v310_v59 }
 0x1c1   :  { %v307_v60 = vpop.f32.mrf.mxu2 }
 0x243   :  { %v388_v1 = vpop.f32.mrf.mxu3 }
 0x244   :  { %v389_v2 = vadd.f32 %v643_v0, %v388_v1 }
 0x246   :  { %v392_v3 = vmax.f32 %v389_v2, 0.0 }
 0x248   :  { %425 = vmatmul.f32.vlgmr.msrb.gmra.mxu2 %v392_v3 }
 0x24b   :  { %v390_v4 = vpop.f32.mrf.mxu3 }
 0x2cb   :  { %v426_v5 = vpop.f32.mrf.mxu2 }
 0x2cc   :  { %v429_v6 = vsub.f32 %v392_v3, %v426_v5 }
 0x2ce   :  { %v430_v7 = vmul.f32 %v429_v6, %v429_v6 }
 0x2d0   :  { %447 = vmatmul.f32.vlgmr.msrb.gmra.mxu0 %v430_v7 }
 0x34d   :  { %v448_v8 = vpop.f32.mrf.mxu0 }
 0x34e   :  { %v449_v9 = vadd.f32 1e-12, %v448_v8 }
 0x350   :  { %646 = vrsqrt.f32 %v449_v9  ;;  %vm457_vm2 = vweird.f32 %v449_v9 }
 0x356   :  { %v647_v10 = vpop.eup %646 }
 0x357   :  { %v452_v11 = vmul.f32 %v647_v10, %v449_v9  ;;  %vm458_vm1 = vweird.f32 %v647_v10 }
 0x358   :  { %vm459_vm3 = vmor %vm457_vm2, %vm458_vm1 }
 0x359   :  { %v453_v12 = vmul.f32 %v647_v10, %v452_v11 }
 0x35b   :  { %v454_v13 = vmul.f32 0.5, %v453_v12 }
 0x35d   :  { %v455_v14 = vsub.f32 1.5, %v454_v13 }
 0x35f   :  { %v456_v15 = vmul.f32 %v647_v10, %v455_v14 }
 0x361   :  { %v460_v17 = vsel %vm459_vm3, %v647_v10, %v456_v15 }
 0x362   :  { %v461_v18 = vmul.f32 %v460_v17, %v429_v6 }
 0x364   :  { %v466_v20 = vmul.f32 %v644_v16, %v461_v18 }
 0x366   :  { %v471_v21 = vadd.f32 %v645_v19, %v466_v20 }
 0x368   :  { %472 = vst [vmem:[#allocation8] sm:$0xff] %v471_v21 }
 0x369   :  { %483 = dma.vmem_to_hbm [thread:$0]  %s479_s23, 128, %s481_s26, [#allocation4]  }
 0x36a   :  { %748 = dma.done.wait [#allocation4], 128  }
 0x36b   :  { %749 = vsyncadd [#allocation4], 4294967168 }
 0x36c   :  { %488 = vsyncpa [#allocation3], 1 }
 0x36d   :  { %489 = vsyncpa [#allocation6], 1 }
 0x36e   :  { %490 = vsyncpa [#allocation4], 1 }

</bundles_post_ra>
